<compile_context>
chip_gen: v6e
topology: v6e:2x2x1
jax: 0.10.0
libtpu: 0.0.40
codegen_flags: <defaults>
</compile_context>

<pallas_src>
import jax
import jax.numpy as jnp
from jax.experimental import pallas as pl
from jax.experimental.pallas import tpu as pltpu

_LANE = 128
_MAX_TILE_M = 512  # 512 rows x 128 lanes x 4 B x 2 comps = 512 KiB per block


def _round_up(x, m):
    return ((x + m - 1) // m) * m


def f_kernel(coef_ref, y_ref, r_ref):
    # coef_ref (SMEM, shape (2,)): [c0, b] with c0 = -(a**3)
    # y_ref / r_ref (VMEM): (2, tile_m, 128) -- lane-dense tiles per component.
    c0 = coef_ref[0]
    b = coef_ref[1]
    y1 = y_ref[1]                      # (tile_m, 128)
    r_ref[0] = c0 * (y1 * y1 * y1)     # -(a*y1)**3 == -(a**3) * y1**3
    r_ref[1] = b * y_ref[0]


def f_forward(t, y, a, b):
    """Pallas equivalent of F.forward(t, y) for y of shape (2, N)."""
    del t  # part of the ODE-function signature, unused by the math
    dtype = y.dtype
    two, n = y.shape
    assert two == 2

    # Lane-dense repack: (2, N) -> (2, M_pad, 128), padded to whole tiles.
    m = _round_up(n, _LANE) // _LANE
    tile_m = _MAX_TILE_M if m >= _MAX_TILE_M else _round_up(m, 8)
    m_pad = _round_up(m, tile_m)
    n_pad = m_pad * _LANE

    y_slab = y if n_pad == n else jnp.pad(y, ((0, 0), (0, n_pad - n)))
    y_slab = y_slab.reshape(2, m_pad, _LANE)

    a = jnp.asarray(a, dtype)
    b = jnp.asarray(b, dtype)
    coef = jnp.stack([-(a * a * a), b])  # [c0, b], folded on host

    grid = (m_pad // tile_m,)
    out = pl.pallas_call(
        f_kernel,
        out_shape=jax.ShapeDtypeStruct((2, m_pad, _LANE), dtype),
        grid=grid,
        in_specs=[
            pl.BlockSpec(memory_space=pltpu.SMEM),                     # coef
            pl.BlockSpec((2, tile_m, _LANE), lambda i: (0, i, 0)),     # y
        ],
        out_specs=pl.BlockSpec((2, tile_m, _LANE), lambda i: (0, i, 0)),
        compiler_params=pltpu.CompilerParams(
            dimension_semantics=("parallel",),
            vmem_limit_bytes=32 * 1024 * 1024,
        ),
    )(coef, y_slab)

    return out.reshape(2, n_pad)[:, :n]


if __name__ == "__main__":
    key = jax.random.PRNGKey(0)

    # Deterministic parameters matching F.__init__ (a=2.0, b=3.0).
    a = jnp.float32(2.0)
    b = jnp.float32(3.0)

    # Small example: t scalar, y of shape (2, N) with N NOT a multiple of 128
    # to exercise the padding path, and large enough for a multi-tile grid.
    N = 131067
    t = jnp.float32(0.5)
    y = jax.random.normal(key, (2, N), dtype=jnp.float32)

    r = f_forward(t, y, a, b)
    jax.block_until_ready(r)

    # Pure-JAX reference check (float32; see note about torch's f64 default).
    r_ref = jnp.stack([-((a * y[1]) ** 3), b * y[0]])
    assert r.shape == y.shape and r.dtype == y.dtype
    assert jnp.allclose(r, r_ref, rtol=1e-5, atol=1e-6)

    print("KERNEL_OK")
</pallas_src>

<mosaic_0001>
module attributes {stable_mosaic.version = 11 : i64} {
  func.func @f_kernel(%arg0: i32, %arg1: memref<2xf32, #tpu.memory_space<smem>>, %arg2: memref<2x512x128xf32, #tpu.memory_space<vmem>>, %arg3: memref<2x512x128xf32, #tpu.memory_space<vmem>>) attributes {dimension_semantics = [#tpu.dimension_semantics<parallel>], iteration_bounds = array<i64: 2>, scalar_prefetch = 0 : i64, scratch_operands = 0 : i64, tpu.core_type = #tpu.core_type<tc>, window_params = [{transform_indices = @transform_0, window_bounds = array<i64: 2>}, {transform_indices = @transform_1, window_bounds = array<i64: 2, 512, 128>}, {transform_indices = @transform_2, window_bounds = array<i64: 2, 512, 128>}]} {
    %c0 = arith.constant 0 : index
    %0 = memref.load %arg1[%c0] : memref<2xf32, #tpu.memory_space<smem>>
    %c1 = arith.constant 1 : index
    %1 = memref.load %arg1[%c1] : memref<2xf32, #tpu.memory_space<smem>>
    %c1_0 = arith.constant 1 : index
    %c0_1 = arith.constant 0 : index
    %c0_2 = arith.constant 0 : index
    %2 = vector.load %arg2[%c1_0, %c0_1, %c0_2] : memref<2x512x128xf32, #tpu.memory_space<vmem>>, vector<1x512x128xf32>
    %3 = vector.shape_cast %2 : vector<1x512x128xf32> to vector<512x128xf32>
    %4 = arith.mulf %3, %3 : vector<512x128xf32>
    %5 = arith.mulf %4, %3 : vector<512x128xf32>
    %6 = vector.broadcast %0 : f32 to vector<512x128xf32>
    %7 = arith.mulf %6, %5 : vector<512x128xf32>
    %c0_3 = arith.constant 0 : index
    %c0_4 = arith.constant 0 : index
    %c0_5 = arith.constant 0 : index
    %8 = vector.load %arg3[%c0_3, %c0_4, %c0_5] : memref<2x512x128xf32, #tpu.memory_space<vmem>>, vector<1x512x128xf32>
    %9 = vector.shape_cast %8 : vector<1x512x128xf32> to vector<512x128xf32>
    %10 = vector.shape_cast %7 : vector<512x128xf32> to vector<1x512x128xf32>
    tpu.vector_store %arg3[%c0_3, %c0_4, %c0_5], %10 {strides = array<i32>} : memref<2x512x128xf32, #tpu.memory_space<vmem>>, vector<1x512x128xf32>,
    %c0_6 = arith.constant 0 : index
    %c0_7 = arith.constant 0 : index
    %c0_8 = arith.constant 0 : index
    %11 = vector.load %arg2[%c0_6, %c0_7, %c0_8] : memref<2x512x128xf32, #tpu.memory_space<vmem>>, vector<1x512x128xf32>
    %12 = vector.shape_cast %11 : vector<1x512x128xf32> to vector<512x128xf32>
    %13 = vector.broadcast %1 : f32 to vector<512x128xf32>
    %14 = arith.mulf %13, %12 : vector<512x128xf32>
    %c1_9 = arith.constant 1 : index
    %c0_10 = arith.constant 0 : index
    %c0_11 = arith.constant 0 : index
    %15 = vector.load %arg3[%c1_9, %c0_10, %c0_11] : memref<2x512x128xf32, #tpu.memory_space<vmem>>, vector<1x512x128xf32>
    %16 = vector.shape_cast %15 : vector<1x512x128xf32> to vector<512x128xf32>
    %17 = vector.shape_cast %14 : vector<512x128xf32> to vector<1x512x128xf32>
    tpu.vector_store %arg3[%c1_9, %c0_10, %c0_11], %17 {strides = array<i32>} : memref<2x512x128xf32, #tpu.memory_space<vmem>>, vector<1x512x128xf32>,
    return
  }
  func.func @transform_0(%arg0: i32) -> i32 {
    %c0_i32 = arith.constant 0 : i32
    %c0_i32_0 = arith.constant 0 : i32
    return %c0_i32 : i32
  }
  func.func @transform_1(%arg0: i32) -> (i32, i32, i32) {
    %c0_i32 = arith.constant 0 : i32
    %c0_i32_0 = arith.constant 0 : i32
    %c0_i32_1 = arith.constant 0 : i32
    return %c0_i32, %arg0, %c0_i32_0 : i32, i32, i32
  }
  func.func @transform_2(%arg0: i32) -> (i32, i32, i32) {
    %c0_i32 = arith.constant 0 : i32
    %c0_i32_0 = arith.constant 0 : i32
    %c0_i32_1 = arith.constant 0 : i32
    return %c0_i32, %arg0, %c0_i32_0 : i32, i32, i32
  }
}

</mosaic_0001>

<bundles_post_ra>
// kernel: tpu_custom_call.1
= control target key start
LH: loop header
LB: loop body
LE: loop exit
PB: predicated region body
PF: predicated region fallthrough
CT: control target
= control target key end

     0   :  { %7 = vsyncpa [#allocation5], 0  ;;  %s1702_s0 = inlined_call_operand.hbm [shape: f32[2], index: 0, kind: input, shape index: {}]   ;;  %s1703_s1 = inlined_call_operand.hbm [shape: f32[2,1024,128], index: 1, kind: input, shape index: {}]   ;;  %s1704_s2 = inlined_call_operand.hbm [shape: f32[2,1024,128], index: 2, kind: output, shape index: {}]  }
   0x1   :  { %8 = vsyncpa [#allocation3], 0 }
   0x2   :  { %10 = vsyncpa [#allocation3 + $0x1], 0 }
   0x3   :  { %11 = vsyncpa [#allocation4], 0 }
   0x4   :  { %13 = vsyncpa [#allocation4 + $0x1], 0  ;;  %s1152_s9 = smov 0   ;;  %s1154_s10 = smov 0  }
   0x5   :  { %s1156_s11 = smov 0   ;;  %s1158_s12 = smov 0  }
   0x6 LB: > { %s1173_s13 = sadd.s32 4294967295, %s1121_s12   ;;  %s841_s14 = sadd.s32 4294967294, %s1121_s12   ;;  %s1121_s12 = sphi %s1158_s12, %s1713_s12   ;;  %s1117_s11 = sphi %s1156_s11, %s1712_s11   ;;  %s1113_s10 = sphi %s1154_s10, %s1711_s10   ;;  %s1109_s9 = sphi %s1152_s9, %s1710_s9  }
   0x7   : > { %s1177_s15 = sadd.s32 1, %s1121_s12   ;;  %s47_s16 = sadd.s32 1, %s1117_s11 }
   0x8   : > { %s44_s17 = ssub.s32 %s1121_s12, %s1177_s15  ;;  %p54_p0 = scmp.ne.s32.totalorder %s1117_s11, %s1113_s10 }
   0x9   : > { %p45_p1 = scmp.eq.s32.totalorder %s44_s17, 0  ;;  %p55_p2 = scmp.eq.s32.totalorder %s1121_s12, 0 }
   0xa   : > { %p60_p3 = scmp.ne.s32.totalorder %s1113_s10, %s1109_s9  ;;  %p61_p4 = scmp.eq.s32.totalorder %s1173_s13, 0 }
   0xb   : > { %s1189_s18 = scalar_select %p45_p1, %s1117_s11, %s47_s16  }
   0xc   : > { %p1191_p5 = por %p55_p2, %p54_p0  ;;  %p1197_p6 = por %p61_p4, %p60_p3 }
   0xd   : > { %p84_p7 = scmp.eq.s32.totalorder %s1173_s13, 1  ;;  %p90_p8 = scmp.eq.s32.totalorder %s841_s14, 1 }
   0xe   : > { %p842_p9 = scmp.ge.s32.totalorder %s1121_s12, 1  ;;  %p97_p10 = scmp.lt.s32.totalorder %s1121_s12, 3 }
   0xf   : > { %p1204_p11 = por %p84_p7, %p54_p0  ;;  %p1208_p12 = por %p90_p8, %p60_p3 }
  0x10   : > { %p1212_p13 = pnand %p842_p9, %p97_p10  ;;  %s1123_s24 = smov [#allocation2]  }
  0x11   : > { %p844_p0 = scmp.ge.s32.totalorder %s1121_s12, 2 }
  0x12   : > { %p1011_p1 = pneg %p1212_p13 }
  0x13   : > { %115 = sbr.rel (%p844_p0) target bundleno = 37 (0x25), region = 20 }
  0x14   : > { %p1012_p2 = pnand %p1011_p1, %p61_p4 }
  0x16   : > { %1014 = dma.hbm_to_smem (!%p1012_p2), %s1702_s0, 16, %s1123_s24, [#allocation5]  }
  0x18   : > { %s119_s27 = sand.u32 1, %s1117_s11   ;;  %s988_s28 = sshll.u32 %s1121_s12, 13 }
  0x19   : > { %s845_s29 = sshll.u32 %s119_s27, 10  ;;  %s129_s4 = scalar_lea.hbm %s1703_s1, %s988_s28 }
  0x1a   : > { %s992_s5 = scalar_select %p1191_p5, [#allocation0], [#allocation12] }
  0x1b   : > { %s123_s6 = scalar_lea.vmem [#allocation6], %s845_s29  ;;  %s1124_s14 = smov 16384  }
  0x1c   : > { %s142_s7 = sshll.u32 %s123_s6, 4  ;;  %s134_s8 = sld [smem:[%s992_s5]]   ;;  %s143_s7 = int_to_ptr.vmem [resolvable:$true] %s142_s7 }
  0x1d   : > { %993 = sst [smem:[#allocation9]] (%p1191_p5), %s1124_s14  ;;  %s1125_s16 = smov 8192  }
  0x1e   : > { %994 = sst [smem:[#allocation9 + $0x1]] (%p1191_p5), %s1125_s16  ;;  %s1126_s17 = smov 64  }
  0x1f   : > { %995 = sst [smem:[#allocation9 + $0x2]] (%p1191_p5), %s1126_s17  ;;  %s1127_s24 = smov 128  }
  0x20   : > { %996 = sst [smem:[#allocation9 + $0x3]] (%p1191_p5), %s1127_s24  ;;  %s1128_s26 = smov 8  }
  0x21   : > { %997 = sst [smem:[#allocation9 + $0x4]] (%p1191_p5), %s1127_s24  ;;  %s120_s29 = scalar_lea.sflag [#allocation3], %s119_s27 }
  0x22   : > { %s848_s25 = sshll.u32 %s134_s8, 26  ;;  %998 = sst [smem:[#allocation9 + $0x5]] (%p1191_p5), %s1128_s26 }
  0x23   : > { %s849_s28 = sadd.s32 134217728, %s848_s25  ;;  %s1129_s30 = smov 131072  }
  0x24   : > { %999 = dma.general (%p1191_p5), %s129_s4, 16384, %s143_s7, %s120_s29, %s1129_s30, [#allocation9], %s849_s28, 0  }
  0x25 PF: > { %167 = sbr.rel (%p1212_p13) target bundleno = 149 (0x95), region = 28 }
  0x2a   : > { %1096 = dma.done.wait (%p61_p4), [#allocation5], 16  }
  0x2b   : > { %1098 = vsyncadd (%p61_p4), [#allocation5], 4294967280  ;;  %s1254_s3 = sand.u32 1, %s1113_s10  }
  0x2c   : > { %s852_s27 = sshll.u32 %s1254_s3, 10  ;;  %s174_s19 = scalar_lea.sflag [#allocation3], %s1254_s3 }
  0x2d   : > { %s1260_s4 = scalar_lea.vmem [#allocation6], %s852_s27 }
  0x2e   : > { %1100 = dma.done.wait (%p1197_p6), %s174_s19, 16384  }
  0x2f   : > { %1102 = vsyncadd (%p1197_p6), %s174_s19, 4294950912 }
  0x30   : > { %182 = sfence }
  0x31   : > { %s1266_s23 = sld [smem:[#allocation2]]  ;;  %v855_v0 = vld [vmem:[%s1260_s4 + $0x200] sm:$0xff]  ;;  %v856_v1 = vld [vmem:[%s1260_s4 + $0x208] sm:$0xff]  ;;  %v857_v2 = vld [vmem:[%s1260_s4 + $0x210] sm:$0xff]  ;;  %s1297_s20 = scalar_lea.vmem [#allocation7], %s852_s27 }
  0x32   : > { %v268_v3 = vmul.f32 %v855_v0, %v855_v0  ;;  %v269_v4 = vmul.f32 %v856_v1, %v856_v1  ;;  %v270_v5 = vmul.f32 %v857_v2, %v857_v2  ;;  %v858_v6 = vld [vmem:[%s1260_s4 + $0x218] sm:$0xff]  ;;  %v859_v7 = vld [vmem:[%s1260_s4 + $0x220] sm:$0xff]  ;;  %v860_v8 = vld [vmem:[%s1260_s4 + $0x228] sm:$0xff]  ;;  %s1436_s5 = sld [smem:[#allocation2 + $0x1]]  ;;  %s720_s6 = scalar_lea.sflag [#allocation4], %s1254_s3 }
  0x33   : > { %v271_v9 = vmul.f32 %v858_v6, %v858_v6  ;;  %v272_v10 = vmul.f32 %v859_v7, %v859_v7  ;;  %v273_v11 = vmul.f32 %v860_v8, %v860_v8  ;;  %v861_v12 = vld [vmem:[%s1260_s4 + $0x230] sm:$0xff]  ;;  %v862_v13 = vld [vmem:[%s1260_s4 + $0x238] sm:$0xff]  ;;  %v863_v14 = vld [vmem:[%s1260_s4 + $0x240] sm:$0xff] }
  0x34   : > { %v332_v15 = vmul.f32 %v855_v0, %v268_v3  ;;  %v333_v16 = vmul.f32 %v856_v1, %v269_v4  ;;  %v334_v17 = vmul.f32 %v857_v2, %v270_v5  ;;  %v274_v18 = vmul.f32 %v861_v12, %v861_v12  ;;  %v864_v19 = vld [vmem:[%s1260_s4 + $0x248] sm:$0xff]  ;;  %v865_v20 = vld [vmem:[%s1260_s4 + $0x250] sm:$0xff]  ;;  %v866_v21 = vld [vmem:[%s1260_s4 + $0x258] sm:$0xff] }
  0x35   : > { %v335_v22 = vmul.f32 %v858_v6, %v271_v9  ;;  %v336_v23 = vmul.f32 %v859_v7, %v272_v10  ;;  %v337_v24 = vmul.f32 %v860_v8, %v273_v11  ;;  %v275_v25 = vmul.f32 %v862_v13, %v862_v13  ;;  %v867_v26 = vld [vmem:[%s1260_s4 + $0x260] sm:$0xff]  ;;  %v868_v39 = vld [vmem:[%s1260_s4 + $0x268] sm:$0xff]  ;;  %v869_v40 = vld [vmem:[%s1260_s4 + $0x270] sm:$0xff] }
  0x36   : > { %v338_v27 = vmul.f32 %v861_v12, %v274_v18  ;;  %v276_v28 = vmul.f32 %v863_v14, %v863_v14  ;;  %v277_v29 = vmul.f32 %v864_v19, %v864_v19  ;;  %v278_v30 = vmul.f32 %v865_v20, %v865_v20  ;;  %v870_v41 = vld [vmem:[%s1260_s4 + $0x278] sm:$0xff]  ;;  %v871_v50 = vld [vmem:[%s1260_s4 + $0x280] sm:$0xff]  ;;  %v872_v55 = vld [vmem:[%s1260_s4 + $0x288] sm:$0xff] }
  0x37   : > { %v1282_v31 = vstv %s1266_s23  ;;  %v339_v32 = vmul.f32 %v862_v13, %v275_v25  ;;  %v279_v33 = vmul.f32 %v866_v21, %v866_v21  ;;  %v280_v34 = vmul.f32 %v867_v26, %v867_v26  ;;  %v873_v56 = vld [vmem:[%s1260_s4 + $0x290] sm:$0xff]  ;;  %v874_v57 = vld [vmem:[%s1260_s4 + $0x298] sm:$0xff]  ;;  %v875_v62 = vld [vmem:[%s1260_s4 + $0x2a0] sm:$0xff] }
  0x38   : > { %v397_v35 = vmul.f32 %v1282_v31, %v332_v15  ;;  %v398_v36 = vmul.f32 %v1282_v31, %v333_v16  ;;  %v399_v37 = vmul.f32 %v1282_v31, %v334_v17  ;;  %v400_v38 = vmul.f32 %v1282_v31, %v335_v22  ;;  %v876_v7 = vld [vmem:[%s1260_s4 + $0x2a8] sm:$0xff]  ;;  %v877_v8 = vld [vmem:[%s1260_s4 + $0x2b0] sm:$0xff]  ;;  %v878_v9 = vld [vmem:[%s1260_s4 + $0x2b8] sm:$0xff] }
  0x39   : > { %v401_v42 = vmul.f32 %v1282_v31, %v336_v23  ;;  %v402_v43 = vmul.f32 %v1282_v31, %v337_v24  ;;  %v403_v44 = vmul.f32 %v1282_v31, %v338_v27  ;;  %v404_v45 = vmul.f32 %v1282_v31, %v339_v32  ;;  %v879_v18 = vld [vmem:[%s1260_s4 + $0x2c0] sm:$0xff]  ;;  %v880_v23 = vld [vmem:[%s1260_s4 + $0x2c8] sm:$0xff]  ;;  %v881_v24 = vld [vmem:[%s1260_s4 + $0x2d0] sm:$0xff] }
  0x3a   : > { %461 = vst [vmem:[%s1297_s20] sm:$0xff] %v397_v35  ;;  %462 = vst [vmem:[%s1297_s20 + $0x8] sm:$0xff] %v398_v36  ;;  %v340_v46 = vmul.f32 %v863_v14, %v276_v28  ;;  %v341_v47 = vmul.f32 %v864_v19, %v277_v29  ;;  %v342_v48 = vmul.f32 %v865_v20, %v278_v30  ;;  %v882_v25 = vld [vmem:[%s1260_s4 + $0x2d8] sm:$0xff]  ;;  %v883_v30 = vld [vmem:[%s1260_s4 + $0x2e0] sm:$0xff] }
  0x3b   : > { %463 = vst [vmem:[%s1297_s20 + $0x10] sm:$0xff] %v399_v37  ;;  %464 = vst [vmem:[%s1297_s20 + $0x18] sm:$0xff] %v400_v38  ;;  %v343_v49 = vmul.f32 %v866_v21, %v279_v33  ;;  %v344_v51 = vmul.f32 %v867_v26, %v280_v34  ;;  %v281_v52 = vmul.f32 %v868_v39, %v868_v39 }
  0x3c   : > { %465 = vst [vmem:[%s1297_s20 + $0x20] sm:$0xff] %v401_v42  ;;  %466 = vst [vmem:[%s1297_s20 + $0x28] sm:$0xff] %v402_v43  ;;  %v282_v53 = vmul.f32 %v869_v40, %v869_v40  ;;  %v283_v54 = vmul.f32 %v870_v41, %v870_v41  ;;  %v405_v58 = vmul.f32 %v1282_v31, %v340_v46  ;;  %v886_v42 = vld [vmem:[%s1260_s4 + $0x2f8] sm:$0xff] }
  0x3d   : > { %467 = vst [vmem:[%s1297_s20 + $0x30] sm:$0xff] %v403_v44  ;;  %468 = vst [vmem:[%s1297_s20 + $0x38] sm:$0xff] %v404_v45  ;;  %v406_v59 = vmul.f32 %v1282_v31, %v341_v47  ;;  %v407_v60 = vmul.f32 %v1282_v31, %v342_v48  ;;  %v408_v61 = vmul.f32 %v1282_v31, %v343_v49 }
  0x3e   : > { %v409_v63 = vmul.f32 %v1282_v31, %v344_v51  ;;  %v345_v0 = vmul.f32 %v868_v39, %v281_v52  ;;  %v346_v1 = vmul.f32 %v869_v40, %v282_v53  ;;  %v347_v2 = vmul.f32 %v870_v41, %v283_v54  ;;  %469 = vst [vmem:[%s1297_s20 + $0x40] sm:$0xff] %v405_v58  ;;  %v884_v40 = vld [vmem:[%s1260_s4 + $0x2e8] sm:$0xff]  ;;  %v885_v41 = vld [vmem:[%s1260_s4 + $0x2f0] sm:$0xff]  ;;  %v887_v51 = vld [vmem:[%s1260_s4 + $0x300] sm:$0xff] }
  0x3f   : > { %470 = vst [vmem:[%s1297_s20 + $0x48] sm:$0xff] %v406_v59  ;;  %471 = vst [vmem:[%s1297_s20 + $0x50] sm:$0xff] %v407_v60  ;;  %v284_v3 = vmul.f32 %v871_v50, %v871_v50  ;;  %v285_v4 = vmul.f32 %v872_v55, %v872_v55  ;;  %v286_v5 = vmul.f32 %v873_v56, %v873_v56  ;;  %v890_v58 = vld [vmem:[%s1260_s4 + $0x318] sm:$0xff] }
  0x40   : > { %472 = vst [vmem:[%s1297_s20 + $0x58] sm:$0xff] %v408_v61  ;;  %v287_v6 = vmul.f32 %v874_v57, %v874_v57  ;;  %473 = vst [vmem:[%s1297_s20 + $0x60] sm:$0xff] %v409_v63  ;;  %v410_v10 = vmul.f32 %v1282_v31, %v345_v0  ;;  %v411_v11 = vmul.f32 %v1282_v31, %v346_v1  ;;  %v891_v63 = vld [vmem:[%s1260_s4 + $0x320] sm:$0xff] }
  0x41   : > { %v412_v12 = vmul.f32 %v1282_v31, %v347_v2  ;;  %v288_v13 = vmul.f32 %v875_v62, %v875_v62  ;;  %v348_v14 = vmul.f32 %v871_v50, %v284_v3  ;;  %v349_v15 = vmul.f32 %v872_v55, %v285_v4 }
  0x42   : > { %v350_v16 = vmul.f32 %v873_v56, %v286_v5  ;;  %v351_v17 = vmul.f32 %v874_v57, %v287_v6  ;;  %474 = vst [vmem:[%s1297_s20 + $0x68] sm:$0xff] %v410_v10  ;;  %475 = vst [vmem:[%s1297_s20 + $0x70] sm:$0xff] %v411_v11  ;;  %v289_v20 = vmul.f32 %v876_v7, %v876_v7  ;;  %v888_v56 = vld [vmem:[%s1260_s4 + $0x308] sm:$0xff]  ;;  %v889_v57 = vld [vmem:[%s1260_s4 + $0x310] sm:$0xff] }
  0x43   : > { %476 = vst [vmem:[%s1297_s20 + $0x78] sm:$0xff] %v412_v12  ;;  %v352_v19 = vmul.f32 %v875_v62, %v288_v13  ;;  %v290_v21 = vmul.f32 %v877_v8, %v877_v8  ;;  %v291_v22 = vmul.f32 %v878_v9, %v878_v9  ;;  %v413_v26 = vmul.f32 %v1282_v31, %v348_v14  ;;  %v894_v10 = vld [vmem:[%s1260_s4 + $0x338] sm:$0xff] }
  0x44   : > { %v414_v27 = vmul.f32 %v1282_v31, %v349_v15  ;;  %v415_v28 = vmul.f32 %v1282_v31, %v350_v16  ;;  %v416_v29 = vmul.f32 %v1282_v31, %v351_v17  ;;  %v353_v33 = vmul.f32 %v876_v7, %v289_v20 }
  0x45   : > { %v417_v32 = vmul.f32 %v1282_v31, %v352_v19  ;;  %v354_v34 = vmul.f32 %v877_v8, %v290_v21  ;;  %v355_v35 = vmul.f32 %v878_v9, %v291_v22  ;;  %477 = vst [vmem:[%s1297_s20 + $0x80] sm:$0xff] %v413_v26  ;;  %v292_v36 = vmul.f32 %v879_v18, %v879_v18  ;;  %v892_v8 = vld [vmem:[%s1260_s4 + $0x328] sm:$0xff]  ;;  %v893_v9 = vld [vmem:[%s1260_s4 + $0x330] sm:$0xff]  ;;  %v895_v19 = vld [vmem:[%s1260_s4 + $0x340] sm:$0xff] }
  0x46   : > { %478 = vst [vmem:[%s1297_s20 + $0x88] sm:$0xff] %v414_v27  ;;  %479 = vst [vmem:[%s1297_s20 + $0x90] sm:$0xff] %v415_v28  ;;  %v293_v37 = vmul.f32 %v880_v23, %v880_v23  ;;  %v294_v38 = vmul.f32 %v881_v24, %v881_v24  ;;  %v295_v39 = vmul.f32 %v882_v25, %v882_v25  ;;  %v898_v26 = vld [vmem:[%s1260_s4 + $0x358] sm:$0xff] }
  0x47   : > { %480 = vst [vmem:[%s1297_s20 + $0x98] sm:$0xff] %v416_v29  ;;  %481 = vst [vmem:[%s1297_s20 + $0xa0] sm:$0xff] %v417_v32  ;;  %v418_v43 = vmul.f32 %v1282_v31, %v353_v33  ;;  %v419_v44 = vmul.f32 %v1282_v31, %v354_v34  ;;  %v420_v45 = vmul.f32 %v1282_v31, %v355_v35  ;;  %v899_v32 = vld [vmem:[%s1260_s4 + $0x360] sm:$0xff] }
  0x48   : > { %v296_v46 = vmul.f32 %v883_v30, %v883_v30  ;;  %v356_v47 = vmul.f32 %v879_v18, %v292_v36  ;;  %v357_v48 = vmul.f32 %v880_v23, %v293_v37  ;;  %v358_v49 = vmul.f32 %v881_v24, %v294_v38  ;;  %v896_v24 = vld [vmem:[%s1260_s4 + $0x348] sm:$0xff] }
  0x49   : > { %v359_v50 = vmul.f32 %v882_v25, %v295_v39  ;;  %482 = vst [vmem:[%s1297_s20 + $0xa8] sm:$0xff] %v418_v43  ;;  %483 = vst [vmem:[%s1297_s20 + $0xb0] sm:$0xff] %v419_v44  ;;  %v297_v53 = vmul.f32 %v884_v40, %v884_v40  ;;  %v298_v54 = vmul.f32 %v885_v41, %v885_v41  ;;  %v897_v25 = vld [vmem:[%s1260_s4 + $0x350] sm:$0xff]  ;;  %v902_v43 = vld [vmem:[%s1260_s4 + $0x378] sm:$0xff] }
  0x4a   : > { %484 = vst [vmem:[%s1297_s20 + $0xb8] sm:$0xff] %v420_v45  ;;  %v360_v52 = vmul.f32 %v883_v30, %v296_v46  ;;  %v299_v55 = vmul.f32 %v886_v42, %v886_v42  ;;  %v421_v59 = vmul.f32 %v1282_v31, %v356_v47  ;;  %v422_v60 = vmul.f32 %v1282_v31, %v357_v48 }
  0x4b   : > { %v423_v61 = vmul.f32 %v1282_v31, %v358_v49  ;;  %v424_v62 = vmul.f32 %v1282_v31, %v359_v50  ;;  %v361_v1 = vmul.f32 %v884_v40, %v297_v53  ;;  %v362_v2 = vmul.f32 %v885_v41, %v298_v54  ;;  %v900_v41 = vld [vmem:[%s1260_s4 + $0x368] sm:$0xff] }
  0x4c   : > { %v425_v0 = vmul.f32 %v1282_v31, %v360_v52  ;;  %v363_v3 = vmul.f32 %v886_v42, %v299_v55  ;;  %485 = vst [vmem:[%s1297_s20 + $0xc0] sm:$0xff] %v421_v59  ;;  %486 = vst [vmem:[%s1297_s20 + $0xc8] sm:$0xff] %v422_v60  ;;  %v300_v4 = vmul.f32 %v887_v51, %v887_v51  ;;  %v901_v42 = vld [vmem:[%s1260_s4 + $0x370] sm:$0xff]  ;;  %v903_v52 = vld [vmem:[%s1260_s4 + $0x380] sm:$0xff] }
  0x4d   : > { %487 = vst [vmem:[%s1297_s20 + $0xd0] sm:$0xff] %v423_v61  ;;  %488 = vst [vmem:[%s1297_s20 + $0xd8] sm:$0xff] %v424_v62  ;;  %v301_v5 = vmul.f32 %v888_v56, %v888_v56  ;;  %v302_v6 = vmul.f32 %v889_v57, %v889_v57  ;;  %v303_v7 = vmul.f32 %v890_v58, %v890_v58  ;;  %v906_v59 = vld [vmem:[%s1260_s4 + $0x398] sm:$0xff] }
  0x4e   : > { %489 = vst [vmem:[%s1297_s20 + $0xe0] sm:$0xff] %v425_v0  ;;  %v426_v11 = vmul.f32 %v1282_v31, %v361_v1  ;;  %v427_v12 = vmul.f32 %v1282_v31, %v362_v2  ;;  %v428_v13 = vmul.f32 %v1282_v31, %v363_v3  ;;  %v304_v14 = vmul.f32 %v891_v63, %v891_v63  ;;  %v907_v0 = vld [vmem:[%s1260_s4 + $0x3a0] sm:$0xff] }
  0x4f   : > { %v364_v15 = vmul.f32 %v887_v51, %v300_v4  ;;  %v365_v16 = vmul.f32 %v888_v56, %v301_v5  ;;  %v366_v17 = vmul.f32 %v889_v57, %v302_v6  ;;  %v367_v18 = vmul.f32 %v890_v58, %v303_v7  ;;  %v904_v57 = vld [vmem:[%s1260_s4 + $0x388] sm:$0xff]  ;;  %v905_v58 = vld [vmem:[%s1260_s4 + $0x390] sm:$0xff] }
  0x50   : > { %490 = vst [vmem:[%s1297_s20 + $0xe8] sm:$0xff] %v426_v11  ;;  %491 = vst [vmem:[%s1297_s20 + $0xf0] sm:$0xff] %v427_v12  ;;  %v368_v20 = vmul.f32 %v891_v63, %v304_v14  ;;  %v305_v21 = vmul.f32 %v892_v8, %v892_v8  ;;  %v306_v22 = vmul.f32 %v893_v9, %v893_v9  ;;  %v910_v11 = vld [vmem:[%s1260_s4 + $0x3b8] sm:$0xff] }
  0x51   : > { %492 = vst [vmem:[%s1297_s20 + $0xf8] sm:$0xff] %v428_v13  ;;  %v307_v23 = vmul.f32 %v894_v10, %v894_v10  ;;  %v429_v27 = vmul.f32 %v1282_v31, %v364_v15  ;;  %v430_v28 = vmul.f32 %v1282_v31, %v365_v16  ;;  %v431_v29 = vmul.f32 %v1282_v31, %v366_v17 }
  0x52   : > { %v432_v30 = vmul.f32 %v1282_v31, %v367_v18  ;;  %v433_v33 = vmul.f32 %v1282_v31, %v368_v20  ;;  %v369_v34 = vmul.f32 %v892_v8, %v305_v21  ;;  %v370_v35 = vmul.f32 %v893_v9, %v306_v22  ;;  %v908_v9 = vld [vmem:[%s1260_s4 + $0x3a8] sm:$0xff]  ;;  %v911_v20 = vld [vmem:[%s1260_s4 + $0x3c0] sm:$0xff] }
  0x53   : > { %v371_v36 = vmul.f32 %v894_v10, %v307_v23  ;;  %493 = vst [vmem:[%s1297_s20 + $0x100] sm:$0xff] %v429_v27  ;;  %494 = vst [vmem:[%s1297_s20 + $0x108] sm:$0xff] %v430_v28  ;;  %v308_v37 = vmul.f32 %v895_v19, %v895_v19  ;;  %v309_v38 = vmul.f32 %v896_v24, %v896_v24  ;;  %v909_v10 = vld [vmem:[%s1260_s4 + $0x3b0] sm:$0xff]  ;;  %v914_v27 = vld [vmem:[%s1260_s4 + $0x3d8] sm:$0xff] }
  0x54   : > { %495 = vst [vmem:[%s1297_s20 + $0x110] sm:$0xff] %v431_v29  ;;  %496 = vst [vmem:[%s1297_s20 + $0x118] sm:$0xff] %v432_v30  ;;  %v310_v39 = vmul.f32 %v897_v25, %v897_v25  ;;  %v311_v40 = vmul.f32 %v898_v26, %v898_v26  ;;  %v434_v44 = vmul.f32 %v1282_v31, %v369_v34 }
  0x55   : > { %497 = vst [vmem:[%s1297_s20 + $0x120] sm:$0xff] %v433_v33  ;;  %v435_v45 = vmul.f32 %v1282_v31, %v370_v35  ;;  %v436_v46 = vmul.f32 %v1282_v31, %v371_v36  ;;  %v312_v47 = vmul.f32 %v899_v32, %v899_v32  ;;  %v372_v48 = vmul.f32 %v895_v19, %v308_v37  ;;  %v915_v33 = vld [vmem:[%s1260_s4 + $0x3e0] sm:$0xff] }
  0x56   : > { %v373_v49 = vmul.f32 %v896_v24, %v309_v38  ;;  %v374_v50 = vmul.f32 %v897_v25, %v310_v39  ;;  %v375_v51 = vmul.f32 %v898_v26, %v311_v40  ;;  %498 = vst [vmem:[%s1297_s20 + $0x128] sm:$0xff] %v434_v44  ;;  %v313_v54 = vmul.f32 %v900_v41, %v900_v41  ;;  %v912_v25 = vld [vmem:[%s1260_s4 + $0x3c8] sm:$0xff]  ;;  %v913_v26 = vld [vmem:[%s1260_s4 + $0x3d0] sm:$0xff]  ;;  %v918_v44 = vld [vmem:[%s1260_s4 + $0x3f8] sm:$0xff] }
  0x57   : > { %499 = vst [vmem:[%s1297_s20 + $0x130] sm:$0xff] %v435_v45  ;;  %500 = vst [vmem:[%s1297_s20 + $0x138] sm:$0xff] %v436_v46  ;;  %v376_v53 = vmul.f32 %v899_v32, %v312_v47  ;;  %v314_v55 = vmul.f32 %v901_v42, %v901_v42  ;;  %v315_v56 = vmul.f32 %v902_v43, %v902_v43 }
  0x58   : > { %v437_v60 = vmul.f32 %v1282_v31, %v372_v48  ;;  %v438_v61 = vmul.f32 %v1282_v31, %v373_v49  ;;  %v439_v62 = vmul.f32 %v1282_v31, %v374_v50  ;;  %v440_v63 = vmul.f32 %v1282_v31, %v375_v51 }
  0x59   : > { %v441_v1 = vmul.f32 %v1282_v31, %v376_v53  ;;  %v377_v2 = vmul.f32 %v900_v41, %v313_v54  ;;  %v378_v3 = vmul.f32 %v901_v42, %v314_v55  ;;  %v379_v4 = vmul.f32 %v902_v43, %v315_v56  ;;  %v916_v42 = vld [vmem:[%s1260_s4 + $0x3e8] sm:$0xff]  ;;  %v917_v43 = vld [vmem:[%s1260_s4 + $0x3f0] sm:$0xff]  ;;  %v525_v53 = vld [vmem:[%s1260_s4] sm:$0xff] }
  0x5a   : > { %501 = vst [vmem:[%s1297_s20 + $0x140] sm:$0xff] %v437_v60  ;;  %502 = vst [vmem:[%s1297_s20 + $0x148] sm:$0xff] %v438_v61  ;;  %v316_v5 = vmul.f32 %v903_v52, %v903_v52  ;;  %v317_v6 = vmul.f32 %v904_v57, %v904_v57  ;;  %v318_v7 = vmul.f32 %v905_v58, %v905_v58  ;;  %v528_v60 = vld [vmem:[%s1260_s4 + $0x18] sm:$0xff]  ;;  %v529_v61 = vld [vmem:[%s1260_s4 + $0x20] sm:$0xff] }
  0x5b   : > { %503 = vst [vmem:[%s1297_s20 + $0x150] sm:$0xff] %v439_v62  ;;  %504 = vst [vmem:[%s1297_s20 + $0x158] sm:$0xff] %v440_v63  ;;  %v319_v8 = vmul.f32 %v906_v59, %v906_v59  ;;  %v442_v12 = vmul.f32 %v1282_v31, %v377_v2  ;;  %v443_v13 = vmul.f32 %v1282_v31, %v378_v3  ;;  %v530_v2 = vld [vmem:[%s1260_s4 + $0x28] sm:$0xff]  ;;  %v531_v3 = vld [vmem:[%s1260_s4 + $0x30] sm:$0xff] }
  0x5c   : > { %505 = vst [vmem:[%s1297_s20 + $0x160] sm:$0xff] %v441_v1  ;;  %v444_v14 = vmul.f32 %v1282_v31, %v379_v4  ;;  %v320_v15 = vmul.f32 %v907_v0, %v907_v0  ;;  %v380_v16 = vmul.f32 %v903_v52, %v316_v5  ;;  %v381_v17 = vmul.f32 %v904_v57, %v317_v6  ;;  %v532_v4 = vld [vmem:[%s1260_s4 + $0x38] sm:$0xff]  ;;  %v533_v5 = vld [vmem:[%s1260_s4 + $0x40] sm:$0xff] }
  0x5d   : > { %v382_v18 = vmul.f32 %v905_v58, %v318_v7  ;;  %v383_v19 = vmul.f32 %v906_v59, %v319_v8  ;;  %506 = vst [vmem:[%s1297_s20 + $0x168] sm:$0xff] %v442_v12  ;;  %507 = vst [vmem:[%s1297_s20 + $0x170] sm:$0xff] %v443_v13  ;;  %v321_v22 = vmul.f32 %v908_v9, %v908_v9  ;;  %v526_v58 = vld [vmem:[%s1260_s4 + $0x8] sm:$0xff]  ;;  %v527_v59 = vld [vmem:[%s1260_s4 + $0x10] sm:$0xff] }
  0x5e   : > { %508 = vst [vmem:[%s1297_s20 + $0x178] sm:$0xff] %v444_v14  ;;  %v384_v21 = vmul.f32 %v907_v0, %v320_v15  ;;  %v322_v23 = vmul.f32 %v909_v10, %v909_v10  ;;  %v323_v24 = vmul.f32 %v910_v11, %v910_v11  ;;  %v445_v28 = vmul.f32 %v1282_v31, %v380_v16  ;;  %v536_v12 = vld [vmem:[%s1260_s4 + $0x58] sm:$0xff]  ;;  %v537_v13 = vld [vmem:[%s1260_s4 + $0x60] sm:$0xff]  ;;  %v538_v15 = vld [vmem:[%s1260_s4 + $0x68] sm:$0xff] }
  0x5f   : > { %v446_v29 = vmul.f32 %v1282_v31, %v381_v17  ;;  %v447_v30 = vmul.f32 %v1282_v31, %v382_v18  ;;  %v448_v32 = vmul.f32 %v1282_v31, %v383_v19  ;;  %v385_v35 = vmul.f32 %v908_v9, %v321_v22  ;;  %v539_v16 = vld [vmem:[%s1260_s4 + $0x70] sm:$0xff]  ;;  %v540_v17 = vld [vmem:[%s1260_s4 + $0x78] sm:$0xff]  ;;  %v541_v18 = vld [vmem:[%s1260_s4 + $0x80] sm:$0xff] }
  0x60   : > { %v449_v34 = vmul.f32 %v1282_v31, %v384_v21  ;;  %v386_v36 = vmul.f32 %v909_v10, %v322_v23  ;;  %v387_v37 = vmul.f32 %v910_v11, %v323_v24  ;;  %509 = vst [vmem:[%s1297_s20 + $0x180] sm:$0xff] %v445_v28  ;;  %v324_v38 = vmul.f32 %v911_v20, %v911_v20  ;;  %v534_v10 = vld [vmem:[%s1260_s4 + $0x48] sm:$0xff]  ;;  %v535_v11 = vld [vmem:[%s1260_s4 + $0x50] sm:$0xff] }
  0x61   : > { %510 = vst [vmem:[%s1297_s20 + $0x188] sm:$0xff] %v446_v29  ;;  %511 = vst [vmem:[%s1297_s20 + $0x190] sm:$0xff] %v447_v30  ;;  %v325_v39 = vmul.f32 %v912_v25, %v912_v25  ;;  %v326_v40 = vmul.f32 %v913_v26, %v913_v26  ;;  %v327_v41 = vmul.f32 %v914_v27, %v914_v27  ;;  %v1476_v14 = vstv %s1436_s5  ;;  %v542_v23 = vld [vmem:[%s1260_s4 + $0x88] sm:$0xff] }
  0x62   : > { %512 = vst [vmem:[%s1297_s20 + $0x198] sm:$0xff] %v448_v32  ;;  %513 = vst [vmem:[%s1297_s20 + $0x1a0] sm:$0xff] %v449_v34  ;;  %v450_v45 = vmul.f32 %v1282_v31, %v385_v35  ;;  %v451_v46 = vmul.f32 %v1282_v31, %v386_v36  ;;  %v452_v47 = vmul.f32 %v1282_v31, %v387_v37  ;;  %v543_v24 = vld [vmem:[%s1260_s4 + $0x90] sm:$0xff]  ;;  %v549_v34 = vld [vmem:[%s1260_s4 + $0xc0] sm:$0xff] }
  0x63   : > { %v328_v48 = vmul.f32 %v915_v33, %v915_v33  ;;  %v388_v49 = vmul.f32 %v911_v20, %v324_v38  ;;  %v389_v50 = vmul.f32 %v912_v25, %v325_v39  ;;  %v390_v51 = vmul.f32 %v913_v26, %v326_v40  ;;  %v544_v25 = vld [vmem:[%s1260_s4 + $0x98] sm:$0xff]  ;;  %v545_v26 = vld [vmem:[%s1260_s4 + $0xa0] sm:$0xff]  ;;  %v547_v32 = vld [vmem:[%s1260_s4 + $0xb0] sm:$0xff] }
  0x64   : > { %v391_v52 = vmul.f32 %v914_v27, %v327_v41  ;;  %514 = vst [vmem:[%s1297_s20 + $0x1a8] sm:$0xff] %v450_v45  ;;  %515 = vst [vmem:[%s1297_s20 + $0x1b0] sm:$0xff] %v451_v46  ;;  %v329_v55 = vmul.f32 %v916_v42, %v916_v42  ;;  %v330_v56 = vmul.f32 %v917_v43, %v917_v43  ;;  %v550_v39 = vld [vmem:[%s1260_s4 + $0xc8] sm:$0xff]  ;;  %v551_v40 = vld [vmem:[%s1260_s4 + $0xd0] sm:$0xff] }
  0x65   : > { %516 = vst [vmem:[%s1297_s20 + $0x1b8] sm:$0xff] %v452_v47  ;;  %v392_v54 = vmul.f32 %v915_v33, %v328_v48  ;;  %v331_v57 = vmul.f32 %v918_v44, %v918_v44  ;;  %v453_v62 = vmul.f32 %v1282_v31, %v388_v49  ;;  %v454_v63 = vmul.f32 %v1282_v31, %v389_v50  ;;  %v548_v33 = vld [vmem:[%s1260_s4 + $0xb8] sm:$0xff]  ;;  %v554_v47 = vld [vmem:[%s1260_s4 + $0xe8] sm:$0xff]  ;;  %v555_v48 = vld [vmem:[%s1260_s4 + $0xf0] sm:$0xff] }
  0x66   : > { %v455_v0 = vmul.f32 %v1282_v31, %v390_v51  ;;  %v456_v1 = vmul.f32 %v1282_v31, %v391_v52  ;;  %v393_v7 = vmul.f32 %v916_v42, %v329_v55  ;;  %v394_v8 = vmul.f32 %v917_v43, %v330_v56  ;;  %v552_v41 = vld [vmem:[%s1260_s4 + $0xd8] sm:$0xff]  ;;  %v553_v42 = vld [vmem:[%s1260_s4 + $0xe0] sm:$0xff]  ;;  %v558_v55 = vld [vmem:[%s1260_s4 + $0x108] sm:$0xff] }
  0x67   : > { %v457_v6 = vmul.f32 %v1282_v31, %v392_v54  ;;  %v395_v9 = vmul.f32 %v918_v44, %v331_v57  ;;  %517 = vst [vmem:[%s1297_s20 + $0x1c0] sm:$0xff] %v453_v62  ;;  %518 = vst [vmem:[%s1297_s20 + $0x1c8] sm:$0xff] %v454_v63  ;;  %v590_v22 = vmul.f32 %v1476_v14, %v525_v53  ;;  %v556_v49 = vld [vmem:[%s1260_s4 + $0xf8] sm:$0xff]  ;;  %v557_v50 = vld [vmem:[%s1260_s4 + $0x100] sm:$0xff] }
  0x68   : > { %519 = vst [vmem:[%s1297_s20 + $0x1d0] sm:$0xff] %v455_v0  ;;  %520 = vst [vmem:[%s1297_s20 + $0x1d8] sm:$0xff] %v456_v1  ;;  %v458_v19 = vmul.f32 %v1282_v31, %v393_v7  ;;  %v459_v20 = vmul.f32 %v1282_v31, %v394_v8  ;;  %v591_v27 = vmul.f32 %v1476_v14, %v526_v58  ;;  %v559_v56 = vld [vmem:[%s1260_s4 + $0x110] sm:$0xff]  ;;  %v560_v57 = vld [vmem:[%s1260_s4 + $0x118] sm:$0xff] }
  0x69   : > { %521 = vst [vmem:[%s1297_s20 + $0x1e0] sm:$0xff] %v457_v6  ;;  %v460_v21 = vmul.f32 %v1282_v31, %v395_v9  ;;  %v592_v28 = vmul.f32 %v1476_v14, %v527_v59  ;;  %v593_v29 = vmul.f32 %v1476_v14, %v528_v60  ;;  %v594_v30 = vmul.f32 %v1476_v14, %v529_v61  ;;  %v546_v31 = vld [vmem:[%s1260_s4 + $0xa8] sm:$0xff]  ;;  %v561_v58 = vld [vmem:[%s1260_s4 + $0x120] sm:$0xff]  ;;  %v563_v0 = vld [vmem:[%s1260_s4 + $0x130] sm:$0xff] }
  0x6a   : > { %522 = vst [vmem:[%s1297_s20 + $0x1e8] sm:$0xff] %v458_v19  ;;  %523 = vst [vmem:[%s1297_s20 + $0x1f0] sm:$0xff] %v459_v20  ;;  %v595_v35 = vmul.f32 %v1476_v14, %v530_v2  ;;  %v596_v36 = vmul.f32 %v1476_v14, %v531_v3  ;;  %v597_v37 = vmul.f32 %v1476_v14, %v532_v4  ;;  %v562_v63 = vld [vmem:[%s1260_s4 + $0x128] sm:$0xff]  ;;  %v564_v1 = vld [vmem:[%s1260_s4 + $0x138] sm:$0xff] }
  0x6b   : > { %524 = vst [vmem:[%s1297_s20 + $0x1f8] sm:$0xff] %v460_v21  ;;  %919 = vst [vmem:[%s1297_s20 + $0x200] sm:$0xff] %v590_v22  ;;  %v598_v38 = vmul.f32 %v1476_v14, %v533_v5  ;;  %v599_v43 = vmul.f32 %v1476_v14, %v534_v10  ;;  %v600_v44 = vmul.f32 %v1476_v14, %v535_v11  ;;  %v565_v6 = vld [vmem:[%s1260_s4 + $0x140] sm:$0xff]  ;;  %v566_v7 = vld [vmem:[%s1260_s4 + $0x148] sm:$0xff] }
  0x6c   : > { %920 = vst [vmem:[%s1297_s20 + $0x208] sm:$0xff] %v591_v27  ;;  %921 = vst [vmem:[%s1297_s20 + $0x210] sm:$0xff] %v592_v28  ;;  %v601_v45 = vmul.f32 %v1476_v14, %v536_v12  ;;  %v602_v46 = vmul.f32 %v1476_v14, %v537_v13  ;;  %v603_v51 = vmul.f32 %v1476_v14, %v538_v15  ;;  %v567_v8 = vld [vmem:[%s1260_s4 + $0x150] sm:$0xff]  ;;  %v568_v13 = vld [vmem:[%s1260_s4 + $0x158] sm:$0xff] }
  0x6d   : > { %922 = vst [vmem:[%s1297_s20 + $0x218] sm:$0xff] %v593_v29  ;;  %923 = vst [vmem:[%s1297_s20 + $0x220] sm:$0xff] %v594_v30  ;;  %v604_v52 = vmul.f32 %v1476_v14, %v539_v16  ;;  %v605_v53 = vmul.f32 %v1476_v14, %v540_v17  ;;  %v606_v54 = vmul.f32 %v1476_v14, %v541_v18  ;;  %v569_v15 = vld [vmem:[%s1260_s4 + $0x160] sm:$0xff]  ;;  %v570_v16 = vld [vmem:[%s1260_s4 + $0x168] sm:$0xff] }
  0x6e   : > { %924 = vst [vmem:[%s1297_s20 + $0x228] sm:$0xff] %v595_v35  ;;  %925 = vst [vmem:[%s1297_s20 + $0x230] sm:$0xff] %v596_v36  ;;  %v607_v59 = vmul.f32 %v1476_v14, %v542_v23  ;;  %v608_v60 = vmul.f32 %v1476_v14, %v543_v24  ;;  %v609_v61 = vmul.f32 %v1476_v14, %v544_v25  ;;  %v571_v21 = vld [vmem:[%s1260_s4 + $0x170] sm:$0xff]  ;;  %v572_v22 = vld [vmem:[%s1260_s4 + $0x178] sm:$0xff] }
  0x6f   : > { %926 = vst [vmem:[%s1297_s20 + $0x238] sm:$0xff] %v597_v37  ;;  %927 = vst [vmem:[%s1297_s20 + $0x240] sm:$0xff] %v598_v38  ;;  %v610_v62 = vmul.f32 %v1476_v14, %v545_v26  ;;  %v611_v2 = vmul.f32 %v1476_v14, %v546_v31  ;;  %v612_v3 = vmul.f32 %v1476_v14, %v547_v32  ;;  %v573_v23 = vld [vmem:[%s1260_s4 + $0x180] sm:$0xff]  ;;  %v574_v28 = vld [vmem:[%s1260_s4 + $0x188] sm:$0xff] }
  0x70   : > { %928 = vst [vmem:[%s1297_s20 + $0x248] sm:$0xff] %v599_v43  ;;  %929 = vst [vmem:[%s1297_s20 + $0x250] sm:$0xff] %v600_v44  ;;  %v613_v4 = vmul.f32 %v1476_v14, %v548_v33  ;;  %v614_v5 = vmul.f32 %v1476_v14, %v549_v34  ;;  %v615_v9 = vmul.f32 %v1476_v14, %v550_v39  ;;  %v575_v29 = vld [vmem:[%s1260_s4 + $0x190] sm:$0xff]  ;;  %v576_v30 = vld [vmem:[%s1260_s4 + $0x198] sm:$0xff] }
  0x71   : > { %930 = vst [vmem:[%s1297_s20 + $0x258] sm:$0xff] %v601_v45  ;;  %931 = vst [vmem:[%s1297_s20 + $0x260] sm:$0xff] %v602_v46  ;;  %v616_v10 = vmul.f32 %v1476_v14, %v551_v40  ;;  %v617_v11 = vmul.f32 %v1476_v14, %v552_v41  ;;  %v618_v12 = vmul.f32 %v1476_v14, %v553_v42  ;;  %v577_v35 = vld [vmem:[%s1260_s4 + $0x1a0] sm:$0xff]  ;;  %v578_v36 = vld [vmem:[%s1260_s4 + $0x1a8] sm:$0xff] }
  0x72   : > { %932 = vst [vmem:[%s1297_s20 + $0x268] sm:$0xff] %v603_v51  ;;  %933 = vst [vmem:[%s1297_s20 + $0x270] sm:$0xff] %v604_v52  ;;  %v619_v17 = vmul.f32 %v1476_v14, %v554_v47  ;;  %v620_v18 = vmul.f32 %v1476_v14, %v555_v48  ;;  %v621_v19 = vmul.f32 %v1476_v14, %v556_v49  ;;  %v579_v37 = vld [vmem:[%s1260_s4 + $0x1b0] sm:$0xff]  ;;  %v580_v42 = vld [vmem:[%s1260_s4 + $0x1b8] sm:$0xff] }
  0x73   : > { %934 = vst [vmem:[%s1297_s20 + $0x278] sm:$0xff] %v605_v53  ;;  %935 = vst [vmem:[%s1297_s20 + $0x280] sm:$0xff] %v606_v54  ;;  %v622_v20 = vmul.f32 %v1476_v14, %v557_v50  ;;  %v623_v24 = vmul.f32 %v1476_v14, %v558_v55  ;;  %v624_v25 = vmul.f32 %v1476_v14, %v559_v56  ;;  %v581_v43 = vld [vmem:[%s1260_s4 + $0x1c0] sm:$0xff]  ;;  %v582_v44 = vld [vmem:[%s1260_s4 + $0x1c8] sm:$0xff] }
  0x74   : > { %936 = vst [vmem:[%s1297_s20 + $0x288] sm:$0xff] %v607_v59  ;;  %937 = vst [vmem:[%s1297_s20 + $0x290] sm:$0xff] %v608_v60  ;;  %v625_v26 = vmul.f32 %v1476_v14, %v560_v57  ;;  %v626_v27 = vmul.f32 %v1476_v14, %v561_v58  ;;  %v627_v31 = vmul.f32 %v1476_v14, %v562_v63  ;;  %v583_v49 = vld [vmem:[%s1260_s4 + $0x1d0] sm:$0xff]  ;;  %v584_v50 = vld [vmem:[%s1260_s4 + $0x1d8] sm:$0xff] }
  0x75   : > { %938 = vst [vmem:[%s1297_s20 + $0x298] sm:$0xff] %v609_v61  ;;  %939 = vst [vmem:[%s1297_s20 + $0x2a0] sm:$0xff] %v610_v62  ;;  %v628_v32 = vmul.f32 %v1476_v14, %v563_v0  ;;  %v629_v33 = vmul.f32 %v1476_v14, %v564_v1  ;;  %v630_v34 = vmul.f32 %v1476_v14, %v565_v6  ;;  %v585_v51 = vld [vmem:[%s1260_s4 + $0x1e0] sm:$0xff]  ;;  %v586_v56 = vld [vmem:[%s1260_s4 + $0x1e8] sm:$0xff] }
  0x76   : > { %940 = vst [vmem:[%s1297_s20 + $0x2a8] sm:$0xff] %v611_v2  ;;  %941 = vst [vmem:[%s1297_s20 + $0x2b0] sm:$0xff] %v612_v3  ;;  %v631_v38 = vmul.f32 %v1476_v14, %v566_v7  ;;  %v632_v39 = vmul.f32 %v1476_v14, %v567_v8  ;;  %v633_v40 = vmul.f32 %v1476_v14, %v568_v13  ;;  %v587_v57 = vld [vmem:[%s1260_s4 + $0x1f0] sm:$0xff]  ;;  %v588_v58 = vld [vmem:[%s1260_s4 + $0x1f8] sm:$0xff] }
  0x77   : > { %942 = vst [vmem:[%s1297_s20 + $0x2b8] sm:$0xff] %v613_v4  ;;  %943 = vst [vmem:[%s1297_s20 + $0x2c0] sm:$0xff] %v614_v5  ;;  %v634_v41 = vmul.f32 %v1476_v14, %v569_v15  ;;  %v635_v45 = vmul.f32 %v1476_v14, %v570_v16  ;;  %v636_v46 = vmul.f32 %v1476_v14, %v571_v21 }
  0x78   : > { %944 = vst [vmem:[%s1297_s20 + $0x2c8] sm:$0xff] %v615_v9  ;;  %945 = vst [vmem:[%s1297_s20 + $0x2d0] sm:$0xff] %v616_v10  ;;  %v637_v47 = vmul.f32 %v1476_v14, %v572_v22  ;;  %v638_v48 = vmul.f32 %v1476_v14, %v573_v23  ;;  %v639_v52 = vmul.f32 %v1476_v14, %v574_v28 }
  0x79   : > { %946 = vst [vmem:[%s1297_s20 + $0x2d8] sm:$0xff] %v617_v11  ;;  %947 = vst [vmem:[%s1297_s20 + $0x2e0] sm:$0xff] %v618_v12  ;;  %v640_v53 = vmul.f32 %v1476_v14, %v575_v29  ;;  %v641_v54 = vmul.f32 %v1476_v14, %v576_v30  ;;  %v642_v55 = vmul.f32 %v1476_v14, %v577_v35 }
  0x7a   : > { %948 = vst [vmem:[%s1297_s20 + $0x2e8] sm:$0xff] %v619_v17  ;;  %949 = vst [vmem:[%s1297_s20 + $0x2f0] sm:$0xff] %v620_v18  ;;  %v643_v59 = vmul.f32 %v1476_v14, %v578_v36  ;;  %v644_v60 = vmul.f32 %v1476_v14, %v579_v37  ;;  %v645_v61 = vmul.f32 %v1476_v14, %v580_v42 }
  0x7b   : > { %950 = vst [vmem:[%s1297_s20 + $0x2f8] sm:$0xff] %v621_v19  ;;  %951 = vst [vmem:[%s1297_s20 + $0x300] sm:$0xff] %v622_v20  ;;  %v646_v62 = vmul.f32 %v1476_v14, %v581_v43  ;;  %v647_v63 = vmul.f32 %v1476_v14, %v582_v44  ;;  %v648_v0 = vmul.f32 %v1476_v14, %v583_v49 }
  0x7c   : > { %952 = vst [vmem:[%s1297_s20 + $0x308] sm:$0xff] %v623_v24  ;;  %953 = vst [vmem:[%s1297_s20 + $0x310] sm:$0xff] %v624_v25  ;;  %v649_v1 = vmul.f32 %v1476_v14, %v584_v50  ;;  %v650_v2 = vmul.f32 %v1476_v14, %v585_v51  ;;  %v651_v3 = vmul.f32 %v1476_v14, %v586_v56 }
  0x7d   : > { %954 = vst [vmem:[%s1297_s20 + $0x318] sm:$0xff] %v625_v26  ;;  %955 = vst [vmem:[%s1297_s20 + $0x320] sm:$0xff] %v626_v27  ;;  %v652_v4 = vmul.f32 %v1476_v14, %v587_v57  ;;  %v653_v5 = vmul.f32 %v1476_v14, %v588_v58 }
  0x7e   : > { %956 = vst [vmem:[%s1297_s20 + $0x328] sm:$0xff] %v627_v31  ;;  %957 = vst [vmem:[%s1297_s20 + $0x330] sm:$0xff] %v628_v32 }
  0x7f   : > { %958 = vst [vmem:[%s1297_s20 + $0x338] sm:$0xff] %v629_v33  ;;  %959 = vst [vmem:[%s1297_s20 + $0x340] sm:$0xff] %v630_v34 }
  0x80   : > { %960 = vst [vmem:[%s1297_s20 + $0x348] sm:$0xff] %v631_v38  ;;  %961 = vst [vmem:[%s1297_s20 + $0x350] sm:$0xff] %v632_v39 }
  0x81   : > { %962 = vst [vmem:[%s1297_s20 + $0x358] sm:$0xff] %v633_v40  ;;  %963 = vst [vmem:[%s1297_s20 + $0x360] sm:$0xff] %v634_v41 }
  0x82   : > { %964 = vst [vmem:[%s1297_s20 + $0x368] sm:$0xff] %v635_v45  ;;  %965 = vst [vmem:[%s1297_s20 + $0x370] sm:$0xff] %v636_v46 }
  0x83   : > { %966 = vst [vmem:[%s1297_s20 + $0x378] sm:$0xff] %v637_v47  ;;  %967 = vst [vmem:[%s1297_s20 + $0x380] sm:$0xff] %v638_v48 }
  0x84   : > { %968 = vst [vmem:[%s1297_s20 + $0x388] sm:$0xff] %v639_v52  ;;  %969 = vst [vmem:[%s1297_s20 + $0x390] sm:$0xff] %v640_v53 }
  0x85   : > { %970 = vst [vmem:[%s1297_s20 + $0x398] sm:$0xff] %v641_v54  ;;  %971 = vst [vmem:[%s1297_s20 + $0x3a0] sm:$0xff] %v642_v55 }
  0x86   : > { %972 = vst [vmem:[%s1297_s20 + $0x3a8] sm:$0xff] %v643_v59  ;;  %973 = vst [vmem:[%s1297_s20 + $0x3b0] sm:$0xff] %v644_v60 }
  0x87   : > { %974 = vst [vmem:[%s1297_s20 + $0x3b8] sm:$0xff] %v645_v61  ;;  %975 = vst [vmem:[%s1297_s20 + $0x3c0] sm:$0xff] %v646_v62 }
  0x88   : > { %976 = vst [vmem:[%s1297_s20 + $0x3c8] sm:$0xff] %v647_v63  ;;  %977 = vst [vmem:[%s1297_s20 + $0x3d0] sm:$0xff] %v648_v0 }
  0x89   : > { %978 = vst [vmem:[%s1297_s20 + $0x3d8] sm:$0xff] %v649_v1  ;;  %979 = vst [vmem:[%s1297_s20 + $0x3e0] sm:$0xff] %v650_v2 }
  0x8a   : > { %980 = vst [vmem:[%s1297_s20 + $0x3e8] sm:$0xff] %v651_v3  ;;  %981 = vst [vmem:[%s1297_s20 + $0x3f0] sm:$0xff] %v652_v4 }
  0x8b   : > { %982 = vst [vmem:[%s1297_s20 + $0x3f8] sm:$0xff] %v653_v5 }
  0x8c   : > { %s989_s7 = sshll.u32 %s1173_s13, 13  ;;  %s743_s8 = sshll.u32 %s1297_s20, 4  ;;  %s744_s8 = int_to_ptr.vmem [resolvable:$true] %s743_s8 }
  0x8d   : > { %s732_s17 = scalar_lea.hbm %s1704_s2, %s989_s7  ;;  %s1130_s24 = smov 8192  }
  0x8e   : > { %1003 = sst [smem:[#allocation11]] (%p1204_p11), %s1130_s24  ;;  %s1131_s25 = smov 16384  }
  0x8f   : > { %1004 = sst [smem:[#allocation11 + $0x1]] (%p1204_p11), %s1131_s25  ;;  %s1132_s26 = smov 64  }
  0x90   : > { %1005 = sst [smem:[#allocation11 + $0x2]] (%p1204_p11), %s1132_s26  ;;  %s1133_s28 = smov 128  }
  0x91   : > { %1006 = sst [smem:[#allocation11 + $0x3]] (%p1204_p11), %s1133_s28  ;;  %s1134_s13 = smov 8  }
  0x92   : > { %1007 = sst [smem:[#allocation11 + $0x4]] (%p1204_p11), %s1133_s28  ;;  %s1135_s29 = smov 131072  }
  0x93   : > { %1008 = sst [smem:[#allocation11 + $0x5]] (%p1204_p11), %s1134_s13  ;;  %s1136_s30 = smov 0  }
  0x94   : > { %1009 = dma.general (%p1204_p11), %s744_s8, 16384, %s732_s17, %s720_s6, %s1135_s29, [#allocation11], %s1136_s30, 0  }
  0x95 PF: > { %s771_s3 = sand.u32 1, %s1109_s9   ;;  %p1016_p3 = pnand %p844_p0, %p1208_p12 }
  0x96   : > { %s772_s27 = scalar_lea.sflag [#allocation4], %s771_s3 }
  0x97   : > { %p1017_p4 = pneg %p1016_p3 }
  0x99   : > { %1104 = dma.done.wait (%p1017_p4), %s772_s27, 16384  }
  0x9a   : > { %1106 = vsyncadd (%p1017_p4), %s772_s27, 4294950912  ;;  %p16_p5 = scmp.ge.s32.totalorder %s1177_s15, 4   ;;  %s1710_s9 = smov %s1113_s10 }
  0x9b   : > { %s1711_s10 = smov %s1117_s11  ;;  %s1712_s11 = smov %s1189_s18 }
  0x9c   : > { %s1713_s12 = smov %s1177_s15  ;;  %18 = sbr.rel (!%p16_p5) target bundleno = 6 (0x6), region = 90 }
  0xa1   :  { %777 = vsyncpa [#allocation3], 1 }
  0xa2   :  { %779 = vsyncpa [#allocation3 + $0x1], 1 }
  0xa3   :  { %780 = vsyncpa [#allocation4], 1 }
  0xa4   :  { %782 = vsyncpa [#allocation4 + $0x1], 1 }
  0xa5   :  { %783 = vsyncpa [#allocation5], 1 }
  0xa6   :  { %785 = vsyncpa [#allocation5 + $0x1], 1 }

</bundles_post_ra>
